<compile_context>
chip_gen: v5e
topology: v5e:2x2
jax: 0.10.0
libtpu: 0.0.40
codegen_flags: <defaults>
</compile_context>

<pallas_src>
import functools

import jax
import jax.numpy as jnp
from jax.experimental import pallas as pl
from jax.experimental.pallas import tpu as pltpu


def _round_up(x, m):
    return ((x + m - 1) // m) * m


def _mlp_kernel(x_ref, w1_ref, b1_ref, w2_ref, b2_ref, w3_ref, b3_ref, o_ref):
    # x_ref: (D_in, tile_b) bf16 ; weights bf16 (out, in) ; biases f32 (out, 1).
    x = x_ref[...]
    # Layer 1: Linear + ReLU (f32 accumulation on the MXU).
    h = jnp.dot(w1_ref[...], x, preferred_element_type=jnp.float32)
    h = jnp.maximum(h + b1_ref[...], 0.0)
    # TODO(synk): Dropout is identity at inference; training-mode dropout would
    # need pltpu.prng_seed + pltpu.stateful_bernoulli masking here.
    # Layer 2: Linear + ReLU.
    h = jnp.dot(w2_ref[...], h.astype(jnp.bfloat16),
                preferred_element_type=jnp.float32)
    h = jnp.maximum(h + b2_ref[...], 0.0)
    # Head: Linear(H2, 1) computed as (1, H2) @ (H2, tile_b) -> lane-dense (1, tile_b).
    o = jnp.dot(w3_ref[...], h.astype(jnp.bfloat16),
                preferred_element_type=jnp.float32)
    o_ref[...] = (o + b3_ref[...]).astype(o_ref.dtype)


@functools.partial(jax.jit, static_argnames=("tile_b",))
def stone_regressor_forward(x, params, *, tile_b=512):
    """Fused MLP forward. x: (B, D_in) f32, params in PyTorch layout -> (B, 1) f32."""
    w1, b1, w2, b2, w3, b3 = params
    B, D_in = x.shape
    H1 = w1.shape[0]
    H2 = w2.shape[0]

    # Tile sizing: lane-dense (multiple of 128); keep >=2 grid steps when the batch
    # allows so v7x's two TensorCores can each take "parallel" grid steps.
    n_lane_tiles = (B + 127) // 128
    tile_b = min(tile_b, 128 * max(1, n_lane_tiles // 2))
    assert tile_b % 128 == 0, "tile_b must be a multiple of 128"
    B_pad = _round_up(B, tile_b)

    if B_pad != B:
        x = jnp.pad(x, ((0, B_pad - B), (0, 0)))

    # Batch-on-lanes layout + bf16 streaming (accumulation stays f32 in-kernel).
    x_t = x.T.astype(jnp.bfloat16)                        # (D_in, B_pad)
    w1b = w1.astype(jnp.bfloat16)                         # (H1, D_in)
    w2b = w2.astype(jnp.bfloat16)                         # (H2, H1)
    w3b = w3.astype(jnp.bfloat16)                         # (1,  H2)
    b1c = b1.reshape(H1, 1).astype(jnp.float32)
    b2c = b2.reshape(H2, 1).astype(jnp.float32)
    b3c = b3.reshape(1, 1).astype(jnp.float32)

    grid = (B_pad // tile_b,)
    flops = 2 * B_pad * (D_in * H1 + H1 * H2 + H2)
    bytes_accessed = (
        x_t.size * 2                                      # bf16 activations in
        + (w1b.size + w2b.size + w3b.size) * 2            # bf16 weights
        + (b1c.size + b2c.size + b3c.size) * 4            # f32 biases
        + B_pad * 4                                       # f32 output
    )

    out = pl.pallas_call(
        _mlp_kernel,
        out_shape=jax.ShapeDtypeStruct((1, B_pad), jnp.float32),
        grid_spec=pltpu.PrefetchScalarGridSpec(
            num_scalar_prefetch=0,
            grid=grid,
            in_specs=[
                pl.BlockSpec((D_in, tile_b), lambda i: (0, i)),  # x (batch on lanes)
                pl.BlockSpec((H1, D_in), lambda i: (0, 0)),      # W1 (full, resident)
                pl.BlockSpec((H1, 1), lambda i: (0, 0)),         # b1
                pl.BlockSpec((H2, H1), lambda i: (0, 0)),        # W2
                pl.BlockSpec((H2, 1), lambda i: (0, 0)),         # b2
                pl.BlockSpec((1, H2), lambda i: (0, 0)),         # W3
                pl.BlockSpec((1, 1), lambda i: (0, 0)),          # b3
            ],
            out_specs=pl.BlockSpec((1, tile_b), lambda i: (0, i)),  # lane-dense store
        ),
        compiler_params=pltpu.CompilerParams(
            dimension_semantics=("parallel",),
        ),
        cost_estimate=pl.CostEstimate(
            flops=flops, transcendentals=0, bytes_accessed=bytes_accessed),
    )(x_t, w1b, b1c, w2b, b2c, w3b, b3c)

    return out[0, :B][:, None]                            # (B, 1), PyTorch layout


def init_params(key, input_dim, hidden_dims):
    """PyTorch-style Linear params: W (out, in), b (out,), U(-1/sqrt(fan_in), ...)."""
    dims = [input_dim] + list(hidden_dims) + [1]
    params = []
    for i in range(len(dims) - 1):
        key, kw, kb = jax.random.split(key, 3)
        bound = 1.0 / (dims[i] ** 0.5)
        w = jax.random.uniform(kw, (dims[i + 1], dims[i]), jnp.float32, -bound, bound)
        b = jax.random.uniform(kb, (dims[i + 1],), jnp.float32, -bound, bound)
        params += [w, b]
    return tuple(params)


def reference_forward_bf16(x, params):
    """Reference matching the kernel's precision: bf16 operands, f32 accumulation."""
    w1, b1, w2, b2, w3, b3 = params
    h = jnp.dot(x.astype(jnp.bfloat16), w1.astype(jnp.bfloat16).T,
                preferred_element_type=jnp.float32)
    h = jnp.maximum(h + b1[None, :], 0.0)
    h = jnp.dot(h.astype(jnp.bfloat16), w2.astype(jnp.bfloat16).T,
                preferred_element_type=jnp.float32)
    h = jnp.maximum(h + b2[None, :], 0.0)
    o = jnp.dot(h.astype(jnp.bfloat16), w3.astype(jnp.bfloat16).T,
                preferred_element_type=jnp.float32)
    return o + b3[None, :]


def reference_forward_f32(x, params):
    w1, b1, w2, b2, w3, b3 = params
    h = jnp.maximum(x @ w1.T + b1[None, :], 0.0)
    h = jnp.maximum(h @ w2.T + b2[None, :], 0.0)
    return h @ w3.T + b3[None, :]


if __name__ == "__main__":
    key = jax.random.PRNGKey(0)
    batch, input_dim = 200, 32          # non-multiple batch exercises the padding path
    hidden_dims = [32, 16]

    key, kx = jax.random.split(key)
    x = jax.random.normal(kx, (batch, input_dim), jnp.float32)
    params = init_params(key, input_dim, hidden_dims)

    out = stone_regressor_forward(x, params, tile_b=128)   # grid = (2,) here
    out = jax.block_until_ready(out)

    assert out.shape == (batch, 1)
    ref_bf16 = reference_forward_bf16(x, params)
    ref_f32 = reference_forward_f32(x, params)
    assert jnp.allclose(out, ref_bf16, atol=2e-3, rtol=2e-3), "mismatch vs bf16 reference"
    assert jnp.allclose(out, ref_f32, atol=1e-1), "mismatch vs f32 reference"

    print("KERNEL_OK")
</pallas_src>

<mosaic_0001>
module attributes {stable_mosaic.version = 11 : i64} {
  func.func @_mlp_kernel(%arg0: i32, %arg1: memref<32x128xbf16, #tpu.memory_space<vmem>>, %arg2: memref<32x32xbf16, #tpu.memory_space<vmem>>, %arg3: memref<32x1xf32, #tpu.memory_space<vmem>>, %arg4: memref<16x32xbf16, #tpu.memory_space<vmem>>, %arg5: memref<16x1xf32, #tpu.memory_space<vmem>>, %arg6: memref<1x16xbf16, #tpu.memory_space<vmem>>, %arg7: memref<1x1xf32, #tpu.memory_space<vmem>>, %arg8: memref<1x128xf32, #tpu.memory_space<vmem>>) attributes {dimension_semantics = [#tpu.dimension_semantics<parallel>], iteration_bounds = array<i64: 2>, scalar_prefetch = 0 : i64, scratch_operands = 0 : i64, tpu.core_type = #tpu.core_type<tc>, window_params = [{transform_indices = @transform_0, window_bounds = array<i64: 32, 128>}, {pipeline_mode = #tpu.pipeline_mode<synchronous>, transform_indices = @transform_1, window_bounds = array<i64: 32, 32>}, {pipeline_mode = #tpu.pipeline_mode<synchronous>, transform_indices = @transform_2, window_bounds = array<i64: 32, 1>}, {pipeline_mode = #tpu.pipeline_mode<synchronous>, transform_indices = @transform_3, window_bounds = array<i64: 16, 32>}, {pipeline_mode = #tpu.pipeline_mode<synchronous>, transform_indices = @transform_4, window_bounds = array<i64: 16, 1>}, {pipeline_mode = #tpu.pipeline_mode<synchronous>, transform_indices = @transform_5, window_bounds = array<i64: 1, 16>}, {pipeline_mode = #tpu.pipeline_mode<synchronous>, transform_indices = @transform_6, window_bounds = array<i64: 1, 1>}, {transform_indices = @transform_7, window_bounds = array<i64: 1, 128>}]} {
    %c0 = arith.constant 0 : index
    %c0_0 = arith.constant 0 : index
    %0 = vector.load %arg1[%c0, %c0_0] : memref<32x128xbf16, #tpu.memory_space<vmem>>, vector<32x128xbf16>
    %c0_1 = arith.constant 0 : index
    %c0_2 = arith.constant 0 : index
    %1 = vector.load %arg2[%c0_1, %c0_2] : memref<32x32xbf16, #tpu.memory_space<vmem>>, vector<32x32xbf16>
    %cst = arith.constant dense<0.000000e+00> : vector<32x128xf32>
    %2 = tpu.matmul %1, %0, %cst {dimension_numbers = #tpu.dot_dimension_numbers<[1], [0], [0], [1], [0, 0, 1, 1], [], []>} : vector<32x32xbf16>, vector<32x128xbf16>, vector<32x128xf32> -> vector<32x128xf32>
    %c0_3 = arith.constant 0 : index
    %c0_4 = arith.constant 0 : index
    %3 = vector.load %arg3[%c0_3, %c0_4] : memref<32x1xf32, #tpu.memory_space<vmem>>, vector<32x1xf32>
    %4 = vector.broadcast %3 : vector<32x1xf32> to vector<32x128xf32>
    %5 = arith.addf %2, %4 : vector<32x128xf32>
    %cst_5 = arith.constant 0.000000e+00 : f32
    %6 = vector.broadcast %cst_5 : f32 to vector<32x128xf32>
    %7 = arith.maximumf %5, %6 : vector<32x128xf32>
    %c0_6 = arith.constant 0 : index
    %c0_7 = arith.constant 0 : index
    %8 = vector.load %arg4[%c0_6, %c0_7] : memref<16x32xbf16, #tpu.memory_space<vmem>>, vector<16x32xbf16>
    %9 = arith.truncf %7 : vector<32x128xf32> to vector<32x128xbf16>
    %cst_8 = arith.constant dense<0.000000e+00> : vector<16x128xf32>
    %10 = tpu.matmul %8, %9, %cst_8 {dimension_numbers = #tpu.dot_dimension_numbers<[1], [0], [0], [1], [0, 0, 1, 1], [], []>} : vector<16x32xbf16>, vector<32x128xbf16>, vector<16x128xf32> -> vector<16x128xf32>
    %c0_9 = arith.constant 0 : index
    %c0_10 = arith.constant 0 : index
    %11 = vector.load %arg5[%c0_9, %c0_10] : memref<16x1xf32, #tpu.memory_space<vmem>>, vector<16x1xf32>
    %12 = vector.broadcast %11 : vector<16x1xf32> to vector<16x128xf32>
    %13 = arith.addf %10, %12 : vector<16x128xf32>
    %cst_11 = arith.constant 0.000000e+00 : f32
    %14 = vector.broadcast %cst_11 : f32 to vector<16x128xf32>
    %15 = arith.maximumf %13, %14 : vector<16x128xf32>
    %c0_12 = arith.constant 0 : index
    %c0_13 = arith.constant 0 : index
    %16 = vector.load %arg6[%c0_12, %c0_13] : memref<1x16xbf16, #tpu.memory_space<vmem>>, vector<1x16xbf16>
    %17 = arith.truncf %15 : vector<16x128xf32> to vector<16x128xbf16>
    %cst_14 = arith.constant dense<0.000000e+00> : vector<1x128xf32>
    %18 = tpu.matmul %16, %17, %cst_14 {dimension_numbers = #tpu.dot_dimension_numbers<[1], [0], [0], [1], [0, 0, 1, 1], [], []>} : vector<1x16xbf16>, vector<16x128xbf16>, vector<1x128xf32> -> vector<1x128xf32>
    %c0_15 = arith.constant 0 : index
    %c0_16 = arith.constant 0 : index
    %19 = vector.load %arg7[%c0_15, %c0_16] : memref<1x1xf32, #tpu.memory_space<vmem>>, vector<1x1xf32>
    %20 = vector.broadcast %19 : vector<1x1xf32> to vector<1x128xf32>
    %21 = arith.addf %18, %20 : vector<1x128xf32>
    %c0_17 = arith.constant 0 : index
    %c0_18 = arith.constant 0 : index
    %22 = vector.load %arg8[%c0_17, %c0_18] : memref<1x128xf32, #tpu.memory_space<vmem>>, vector<1x128xf32>
    tpu.vector_store %arg8[%c0_17, %c0_18], %21 {strides = array<i32>} : memref<1x128xf32, #tpu.memory_space<vmem>>, vector<1x128xf32>,
    return
  }
  func.func @transform_0(%arg0: i32) -> (i32, i32) {
    %c0_i32 = arith.constant 0 : i32
    %c0_i32_0 = arith.constant 0 : i32
    return %c0_i32, %arg0 : i32, i32
  }
  func.func @transform_1(%arg0: i32) -> (i32, i32) {
    %c0_i32 = arith.constant 0 : i32
    %c0_i32_0 = arith.constant 0 : i32
    %c0_i32_1 = arith.constant 0 : i32
    return %c0_i32, %c0_i32_0 : i32, i32
  }
  func.func @transform_2(%arg0: i32) -> (i32, i32) {
    %c0_i32 = arith.constant 0 : i32
    %c0_i32_0 = arith.constant 0 : i32
    %c0_i32_1 = arith.constant 0 : i32
    return %c0_i32, %c0_i32_0 : i32, i32
  }
  func.func @transform_3(%arg0: i32) -> (i32, i32) {
    %c0_i32 = arith.constant 0 : i32
    %c0_i32_0 = arith.constant 0 : i32
    %c0_i32_1 = arith.constant 0 : i32
    return %c0_i32, %c0_i32_0 : i32, i32
  }
  func.func @transform_4(%arg0: i32) -> (i32, i32) {
    %c0_i32 = arith.constant 0 : i32
    %c0_i32_0 = arith.constant 0 : i32
    %c0_i32_1 = arith.constant 0 : i32
    return %c0_i32, %c0_i32_0 : i32, i32
  }
  func.func @transform_5(%arg0: i32) -> (i32, i32) {
    %c0_i32 = arith.constant 0 : i32
    %c0_i32_0 = arith.constant 0 : i32
    %c0_i32_1 = arith.constant 0 : i32
    return %c0_i32, %c0_i32_0 : i32, i32
  }
  func.func @transform_6(%arg0: i32) -> (i32, i32) {
    %c0_i32 = arith.constant 0 : i32
    %c0_i32_0 = arith.constant 0 : i32
    %c0_i32_1 = arith.constant 0 : i32
    return %c0_i32, %c0_i32_0 : i32, i32
  }
  func.func @transform_7(%arg0: i32) -> (i32, i32) {
    %c0_i32 = arith.constant 0 : i32
    %c0_i32_0 = arith.constant 0 : i32
    return %c0_i32, %arg0 : i32, i32
  }
}

</mosaic_0001>

<bundles_post_ra>
// kernel: stone_regressor_forward.1
= control target key start
LH: loop header
LB: loop body
LE: loop exit
PB: predicated region body
PF: predicated region fallthrough
CT: control target
= control target key end

     0   :  { %s761_s0 = inlined_call_operand.vmem [shape: bf16[32,256], index: 0, kind: input, shape index: {}]   ;;  %s762_s1 = inlined_call_operand.vmem [shape: bf16[32,32], index: 1, kind: input, shape index: {}]   ;;  %s763_s2 = inlined_call_operand.vmem [shape: f32[32,1], index: 2, kind: input, shape index: {}]   ;;  %s764_s3 = inlined_call_operand.vmem [shape: bf16[16,32], index: 3, kind: input, shape index: {}]   ;;  %s765_s4 = inlined_call_operand.vmem [shape: f32[16,1], index: 4, kind: input, shape index: {}]   ;;  %s766_s5 = inlined_call_operand.vmem [shape: bf16[1,16], index: 5, kind: input, shape index: {}]   ;;  %s767_s6 = inlined_call_operand.<no memory space> [shape: f32[1,1], index: 6, kind: input, shape index: {}]   ;;  %s768_s7 = inlined_call_operand.vmem [shape: f32[1,256], index: 7, kind: output, shape index: {}]  }
   0x1   :  { %v12_v0 = vstv %s767_s6 }
   0x2   :  { %13 = vst [vmem:[#allocation2] sm:$0x1] %v12_v0 }
   0x3   :  { %s674_s26 = smov 0   ;;  %s676_s27 = smov 0  }
   0x4   :  { %s678_s28 = smov 0  }
   0x5 LB: > { %s537_s6 = sadd.s32 4294967295, %s628_s28   ;;  %s691_s29 = sadd.s32 1, %s628_s28   ;;  %s628_s28 = sphi %s678_s28, %s771_s28   ;;  %s624_s27 = sphi %s676_s27, %s770_s27   ;;  %s620_s26 = sphi %s674_s26, %s769_s26  }
   0x6   : > { %s23_s30 = ssub.s32 %s628_s28, %s691_s29  ;;  %s26_s8 = sadd.s32 1, %s624_s27 }
   0x7   : > { %p24_p0 = scmp.eq.s32.totalorder %s23_s30, 0  ;;  %p33_p1 = scmp.ne.s32.totalorder %s624_s27, %s620_s26 }
   0x8   : > { %p34_p2 = scmp.eq.s32.totalorder %s628_s28, 0  ;;  %p540_p4 = scmp.ge.s32.totalorder %s628_s28, 2 }
   0x9   : > { %s700_s9 = scalar_select %p24_p0, %s624_s27, %s26_s8  }
   0xa   : > { %p35_p3 = por %p34_p2, %p33_p1  ;;  %229 = sbr.rel (%p540_p4) target bundleno = 23 (0x17), region = 40 }
   0xf   : > { %232 = sbr.rel (!%p35_p3) target bundleno = 23 (0x17), region = 44  ;;  %s234_s10 = sand.u32 (%p35_p3), 1, %s624_s27  }
  0x10   : > { %s542_s11 = sshll.u32 (%p35_p3), %s628_s28, 2  ;;  %s541_s12 = sshll.u32 (%p35_p3), %s234_s10, 4 }
  0x11   : > { %s238_s15 = scalar_lea.vmem (%p35_p3), %s761_s0, %s542_s11  ;;  %s236_s16 = scalar_lea.vmem (%p35_p3), [#allocation3], %s541_s12 }
  0x12   : > { %v255_v1 = vld [vmem:[%s238_s15] sm:$0xf] (%p35_p3)  ;;  %v257_v2 = vld [vmem:[%s238_s15 + $0x8] sm:$0xf] (%p35_p3)  ;;  %v259_v3 = vld [vmem:[%s238_s15 + $0x10] sm:$0xf] (%p35_p3) }
  0x13   : > { %256 = vst [vmem:[%s236_s16] sm:$0xf] (%p35_p3), %v255_v1  ;;  %v261_v4 = vld [vmem:[%s238_s15 + $0x18] sm:$0xf] (%p35_p3) }
  0x14   : > { %258 = vst [vmem:[%s236_s16 + $0x4] sm:$0xf] %v257_v2 }
  0x15   : > { %260 = vst [vmem:[%s236_s16 + $0x8] sm:$0xf] %v259_v3 }
  0x16   : > { %262 = vst [vmem:[%s236_s16 + $0xc] sm:$0xf] %v261_v4 }
  0x17 PF: > { %p543_p5 = scmp.ge.s32.totalorder %s628_s28, 1  ;;  %p293_p6 = scmp.lt.s32.totalorder %s628_s28, 3 }
  0x19   : > { %p294_p7 = pnand %p543_p5, %p293_p6 }
  0x1a   : > { %s300_s17 = sand.u32 (!%p294_p7), 1, %s620_s26   ;;  %p329_p8 = scmp.lt.s32.totalorder (!%p294_p7), %s537_s6, 1 }
  0x1b   : > { %297 = sbr.rel (%p294_p7) target bundleno = 479 (0x1df), region = 85  ;;  %s544_s20 = sshll.u32 (!%p294_p7), %s300_s17, 4 }
  0x1c   : > { %s302_s23 = scalar_lea.vmem (!%p294_p7), [#allocation3], %s544_s20 }
  0x20   : > { %v343_v5 = vld [vmem:[%s763_s2 + $0x10] sm:$0xff]  ;;  %v630_v6 = vmov 0   ;;  %v341_v7 = vld [vmem:[%s763_s2] sm:$0xff]  ;;  %v344_v10 = vld [vmem:[%s763_s2 + $0x18] sm:$0xff]  ;;  %vm387_vm0 = vcmask 261120   ;;  %vm466_vm1 = vcmask 130048  }
  0x21   : > { %603 = vset.pattern.permute.xlu0 %v630_v6  ;;  %604 = vset.pattern.permute.xlu1 %v630_v6  ;;  %v572_v8 = vld [vmem:[%s302_s23 + $0x8] sm:$0xff]  ;;  %v571_v9 = vld [vmem:[%s302_s23] sm:$0xff]  ;;  %s773_s6 = smov (!%p329_p8, %s537_s6), 1 }
  0x22   : > { %357 = vperm.xlu0 %603, %v343_v5   ;;  %347 = vperm.xlu1 %604, %v341_v7   ;;  %v342_v11 = vld [vmem:[%s763_s2 + $0x8] sm:$0xff]  ;;  %v573_v13 = vld [vmem:[%s762_s1] sm:$0xff]  ;;  %s331_s23 = scalar_lea.vmem %s768_s7, %s773_s6 }
  0x23   : > { %605 = vset.pattern.permute.xlu2 %v630_v6  ;;  %576 = vmatpush.bf16.msra.mxu3 %v572_v8  ;;  %v574_v12 = vld [vmem:[%s762_s1 + $0x8] sm:$0xff]  ;;  %v459_v14 = vld [vmem:[#allocation2] sm:$0x1] }
  0x24   : > { %400 = vmatpush.bf16.msra.mxu0 %v572_v8  ;;  %v421_v15 = vld [vmem:[%s765_s4] sm:$0xff]  ;;  %v422_v18 = vld [vmem:[%s765_s4 + $0x8] sm:$0xff] }
  0x25   : > { %425 = vperm.xlu2 %605, %v421_v15   ;;  %v575_v35 = vld [vmem:[%s764_s3] sm:$0xff] }
  0x26   : > { %v457_v45 = vld [vmem:[%s766_s5] sm:$0x1] }
  0x27   : > { %577 = vmatpush.bf16.msra.mxu3 %v571_v9 }
  0x28   : > { %401 = vmatpush.bf16.msra.mxu0 %v571_v9 }
  0x2a   : > { %362 = vperm.xlu0 %603, %v344_v10   ;;  %352 = vperm.xlu1 %604, %v342_v11  }
  0x2b   : > { %562 = vmatmul.msk.bf16.vlgmr.msra.gmra.mxu3 %vm387_vm0, %v574_v12  ;;  %561 = vmatmul.msk.bf16.vlgmr.msra.gmra.mxu0 %vm387_vm0, %v573_v13 }
  0x2d   : > { %430 = vperm.xlu2 %605, %v422_v18  }
  0x32   : > { %462 = vperm.xlu0 %603, %v459_v14  }
  0x7f   : > { %v426_v36 = vpop.permute.xlu2 %425 }
  0x87   : > { %v431_v39 = vpop.permute.xlu2 %430 }
  0x94   : > { %v348_v16 = vpop.permute.xlu1 %347  ;;  %v358_v19 = vpop.permute.xlu0 %357 }
  0x9c   : > { %v353_v21 = vpop.permute.xlu1 %352  ;;  %v363_v24 = vpop.permute.xlu0 %362 }
  0xa4   : > { %v463_v46 = vpop.permute.xlu0 %462 }
  0xa5   : > { %v465_v47 = vperm.slane %v463_v46, 0 }
  0xa8   : > { %v403_v17 = vpop.f32.mrf.mxu0 }
  0xa9   : > { %v404_v26 = vadd.f32 %v403_v17, %v348_v16 }
  0xab   : > { %v413_v31 = vmax.f32 %v404_v26, 0.0 }
  0xae   : > { %v408_v20 = vpop.f32.mrf.mxu3 }
  0xaf   : > { %v409_v23 = vadd.f32 %v408_v20, %v358_v19 }
  0xb0   : > { %v405_v22 = vpop.f32.mrf.mxu0 }
  0xb1   : > { %v406_v27 = vadd.f32 %v405_v22, %v353_v21  ;;  %v415_v29 = vmax.f32 %v409_v23, 0.0 }
  0xb3   : > { %v414_v32 = vmax.f32 %v406_v27, 0.0 }
  0xb5   : > { %v419_v34 = vpack.c.bf16 %v414_v32, %v413_v31 }
  0xb6   : > { %v410_v25 = vpop.f32.mrf.mxu3 }
  0xb7   : > { %v411_v28 = vadd.f32 %v410_v25, %v363_v24 }
  0xb9   : > { %v416_v30 = vmax.f32 %v411_v28, 0.0 }
  0xbb   : > { %v420_v33 = vpack.c.bf16 %v416_v30, %v415_v29 }
  0xbd   : > { %447 = vmatpush.bf16.msra.mxu1 %v420_v33 }
  0xc1   : > { %448 = vmatpush.bf16.msra.mxu1 %v419_v34 }
  0xc4   : > { %567 = vmatmul.msk.bf16.vlgmr.msra.gmra.mxu1 %vm387_vm0, %v575_v35 }
 0x141   : > { %v450_v37 = vpop.f32.mrf.mxu1 }
 0x142   : > { %v451_v38 = vadd.f32 %v450_v37, %v426_v36 }
 0x144   : > { %v455_v42 = vmax.f32 %v451_v38, 0.0 }
 0x149   : > { %v452_v40 = vpop.f32.mrf.mxu1 }
 0x14a   : > { %v453_v41 = vadd.f32 %v452_v40, %v431_v39 }
 0x14c   : > { %v456_v43 = vmax.f32 %v453_v41, 0.0 }
 0x14e   : > { %v458_v44 = vpack.c.bf16 %v456_v43, %v455_v42 }
 0x150   : > { %477 = vmatpush.bf16.msra.mxu2 %v458_v44 }
 0x153   : > { %568 = vmatmul.msk.bf16.vlgmr.msra.gmra.mxu2 %vm466_vm1, %v457_v45 }
 0x1d6   : > { %v479_v48 = vpop.f32.mrf.mxu2 }
 0x1d7   : > { %v480_v49 = vadd.f32 %v479_v48, %v465_v47 }
 0x1d9   : > { %483 = vst [vmem:[%s331_s23] sm:$0x1] %v480_v49 }
 0x1de   : > { %v481_v50 = vpop.f32.mrf.mxu2 }
 0x1df PF: > { %p16_p9 = scmp.ge.s32.totalorder %s691_s29, 4   ;;  %s769_s26 = smov %s624_s27 }
 0x1e0   : > { %s770_s27 = smov %s700_s9  ;;  %s771_s28 = smov %s691_s29 }
 0x1e1   :  { %18 = sbr.rel (!%p16_p9) target bundleno = 5 (0x5), region = 124 }

</bundles_post_ra>
